<compile_context>
chip_gen: v6e
topology: v6e:2x2x1
jax: 0.10.0
libtpu: 0.0.40
codegen_flags: <defaults>
</compile_context>

<pallas_src>
import math
import functools

import jax
import jax.numpy as jnp
from jax.experimental import pallas as pl
from jax.experimental.pallas import tpu as pltpu


# ----------------------------- in-kernel math helpers (f32) -----------------------------
def _gelu_tanh(v):
    # PyTorch nn.GELU(approximate='tanh')
    c = math.sqrt(2.0 / math.pi)
    return 0.5 * v * (1.0 + jnp.tanh(c * (v + 0.044715 * v * v * v)))


def _masked_layernorm(v, mask, n_valid, eps=1e-6):
    # v is exactly zero on padded lanes (kernel invariant); statistics over the first
    # n_valid lanes only.  Matches nn.LayerNorm(eps=1e-6, elementwise_affine=False).
    inv_n = 1.0 / float(n_valid)
    mu = jnp.sum(v, axis=-1, keepdims=True) * inv_n
    diff = (v - mu) * mask
    var = jnp.sum(diff * diff, axis=-1, keepdims=True) * inv_n
    return diff * jax.lax.rsqrt(var + eps)


def _modulate(v, shift, scale):
    return v * (1.0 + scale) + shift


# ----------------------------------- kernel ------------------------------------
def _dit_blocks_kernel(x0_ref, cs_ref, mask_ref,      # resident activations / mask
                       w_in_ref, w_out_ref, b_ref,    # per-layer streamed (bf16 / f32)
                       x_ref,                         # output block, carried across depth
                       *, Hp, Hmp, H):
    d = pl.program_id(0)

    @pl.when(d == 0)
    def _init():
        x_ref[...] = x0_ref[...]

    x = x_ref[...]
    mask = mask_ref[...]
    cs_b = cs_ref[...].astype(jnp.bfloat16)

    # --- all six adaLN chunks with ONE (N, Hp) @ (Hp, 6*Hp) matmul; 128-aligned slices ---
    ada = jnp.dot(cs_b, w_in_ref[:, :6 * Hp],
                  preferred_element_type=jnp.float32) + b_ref[:, :6 * Hp]
    shift_msa = ada[:, 0 * Hp:1 * Hp]
    scale_msa = ada[:, 1 * Hp:2 * Hp]
    gate_msa = ada[:, 2 * Hp:3 * Hp]
    shift_mlp = ada[:, 3 * Hp:4 * Hp]
    scale_mlp = ada[:, 4 * Hp:5 * Hp]
    gate_mlp = ada[:, 5 * Hp:6 * Hp]

    # --- attention branch: seq_len == 1 => softmax == 1 => attn(h) == (h@Wv+bv)@Wproj+bproj
    #     (Wv@Wproj pre-fused in the wrapper; exact for eval mode / no attention dropout) ---
    h = _modulate(_masked_layernorm(x, mask, H), shift_msa, scale_msa)
    attn = jnp.dot(h.astype(jnp.bfloat16), w_in_ref[:, 6 * Hp:7 * Hp],
                   preferred_element_type=jnp.float32) + b_ref[:, 6 * Hp:7 * Hp]
    x = x + gate_msa * attn

    # --- MLP branch ---
    h = _modulate(_masked_layernorm(x, mask, H), shift_mlp, scale_mlp)
    h1 = jnp.dot(h.astype(jnp.bfloat16), w_in_ref[:, 7 * Hp:7 * Hp + Hmp],
                 preferred_element_type=jnp.float32) + b_ref[:, 7 * Hp:7 * Hp + Hmp]
    h1 = _gelu_tanh(h1)
    h2 = jnp.dot(h1.astype(jnp.bfloat16), w_out_ref[...],
                 preferred_element_type=jnp.float32) + b_ref[:, 7 * Hp + Hmp:]
    x_ref[...] = x + gate_mlp * h2


# --------------------------------- wrapper --------------------------------------
def scedit_forward(params, x, t, y, *, stream_dtype=jnp.bfloat16):
    """x: (N, latent_dim) f32, t: (N,) f32 timesteps, y: (N,) int32 labels (eval mode)."""
    N = x.shape[0]
    H = params["wx"].shape[1]
    depth = params["ada_w"].shape[0]
    Hm = params["fc1_w"].shape[2]
    freq_dim = params["wt1"].shape[0]

    def rup(a, m):
        return max(m, ((a + m - 1) // m) * m)

    Hp, Hmp = rup(H, 128), rup(Hm, 128)
    N_pad = rup(N, 8)

    # -------- prologue (plain JAX, tiny one-shot matmuls; hoisted out of the depth grid) -----
    half = freq_dim // 2
    freqs = jnp.exp(-math.log(10000.0) * jnp.arange(half, dtype=jnp.float32) / half)
    args = t.astype(jnp.float32)[:, None] * freqs[None, :]
    tfreq = jnp.concatenate([jnp.cos(args), jnp.sin(args)], axis=-1)     # (N, freq_dim)
    yemb = params["y_table"][y]                                          # eval: no label drop
    t_emb = jax.nn.silu(tfreq @ params["wt1"] + params["bt1"]) @ params["wt2"] + params["bt2"]
    cs = jax.nn.silu(t_emb + yemb)                                       # SiLU(c), shared adaLN input
    x0 = x @ params["wx"] + params["bx"] + params["pos"]

    # -------- per-layer weight packing --------
    # (a) seq_len == 1 Q/K fold (exact: softmax over one key == 1; eval, no attn dropout)
    v_w = params["qkv_w"][:, :, 2 * H:3 * H]
    v_b = params["qkv_b"][:, :, 2 * H:3 * H]
    attn_w = jnp.einsum("dij,djk->dik", v_w, params["proj_w"])           # (depth, H, H)
    attn_b = jnp.einsum("dij,djk->dik", v_b, params["proj_w"]) + params["proj_b"]

    # (b) pad every feature dim to a 128-lane multiple (padded rows/cols are zero)
    def padA(a, rows, cols):
        return jnp.pad(a, ((0, 0), (0, rows - a.shape[1]), (0, cols - a.shape[2])))

    ada_w = params["ada_w"].reshape(depth, H, 6, H)
    ada_w = jnp.pad(ada_w, ((0, 0), (0, Hp - H), (0, 0), (0, Hp - H))).reshape(depth, Hp, 6 * Hp)
    ada_b = params["ada_b"].reshape(depth, 1, 6, H)
    ada_b = jnp.pad(ada_b, ((0, 0), (0, 0), (0, 0), (0, Hp - H))).reshape(depth, 1, 6 * Hp)
    attn_w = padA(attn_w, Hp, Hp)
    attn_b = padA(attn_b, 1, Hp)
    fc1_w = padA(params["fc1_w"], Hp, Hmp)
    fc1_b = padA(params["fc1_b"], 1, Hmp)
    fc2_w = padA(params["fc2_w"], Hmp, Hp)
    fc2_b = padA(params["fc2_b"], 1, Hp)

    # (c) consolidate to 3 streamed slabs per layer; weights stream as bf16, f32 accumulate
    w_in = jnp.concatenate([ada_w, attn_w, fc1_w], axis=-1).astype(stream_dtype)  # (d,Hp,7Hp+Hmp)
    w_out = fc2_w.astype(stream_dtype)                                            # (d,Hmp,Hp)
    b_in = jnp.concatenate([ada_b, attn_b, fc1_b, fc2_b], axis=-1)                # (d,1,8Hp+Hmp) f32

    # -------- activations padded; padded lanes are exactly zero --------
    x0_p = jnp.pad(x0, ((0, N_pad - N), (0, Hp - H)))
    cs_p = jnp.pad(cs, ((0, N_pad - N), (0, Hp - H)))
    mask = (jnp.arange(Hp, dtype=jnp.float32) < H).astype(jnp.float32)[None, :]

    # -------- VMEM budget: double-buffered streams + residents, capped to physical VMEM ----
    wbytes = jnp.dtype(stream_dtype).itemsize
    per_layer = (Hp * (7 * Hp + Hmp) + Hmp * Hp) * wbytes + (8 * Hp + Hmp) * 4
    resident = (3 * N_pad * Hp + Hp) * 4
    try:
        phys_vmem = int(getattr(pltpu.get_tpu_info(), "vmem_capacity_bytes", 128 << 20))
    except Exception:
        phys_vmem = 128 << 20
    needed = 2 * per_layer + 2 * resident + N_pad * Hp * 4 + (8 << 20)
    vmem_limit = int(max(16 << 20, min(needed, int(0.75 * phys_vmem))))

    kern = functools.partial(_dit_blocks_kernel, Hp=Hp, Hmp=Hmp, H=H)
    res = lambda shape: pl.BlockSpec(shape, lambda d: (0,) * len(shape))

    grid_spec = pltpu.PrefetchScalarGridSpec(
        num_scalar_prefetch=0,
        grid=(depth,),
        in_specs=[
            res((N_pad, Hp)),                                             # x0 (resident)
            res((N_pad, Hp)),                                             # SiLU(c) (resident)
            res((1, Hp)),                                                 # lane mask
            pl.BlockSpec((None, Hp, 7 * Hp + Hmp), lambda d: (d, 0, 0)),  # streamed weight slab
            pl.BlockSpec((None, Hmp, Hp), lambda d: (d, 0, 0)),           # streamed fc2 slab
            pl.BlockSpec((None, 1, 8 * Hp + Hmp), lambda d: (d, 0, 0)),   # fused bias row
        ],
        out_specs=pl.BlockSpec((N_pad, Hp), lambda d: (0, 0)),            # carried x / output
    )

    flops = int(depth * 2 * N_pad * (7 * Hp * Hp + 2 * Hp * Hmp))
    transcendentals = int(depth * N_pad * (Hmp + 4))
    bytes_accessed = int(depth * per_layer + resident + N_pad * Hp * 4)

    xL_p = pl.pallas_call(
        kern,
        out_shape=jax.ShapeDtypeStruct((N_pad, Hp), jnp.float32),
        grid_spec=grid_spec,
        compiler_params=pltpu.CompilerParams(
            dimension_semantics=("arbitrary",),   # x is carried across depth -> sequential
            vmem_limit_bytes=vmem_limit,
        ),
        cost_estimate=pl.CostEstimate(
            flops=flops, transcendentals=transcendentals, bytes_accessed=bytes_accessed),
    )(x0_p, cs_p, mask, w_in, w_out, b_in)

    # -------- epilogue (plain JAX; final adaLN + linear, hoisted out of the grid) --------
    xL = xL_p[:N, :H]
    fada = cs @ params["fada_w"] + params["fada_b"]
    shift, scale = fada[:, :H], fada[:, H:]
    mu = jnp.mean(xL, axis=-1, keepdims=True)
    var = jnp.mean((xL - mu) ** 2, axis=-1, keepdims=True)
    hn = (xL - mu) * jax.lax.rsqrt(var + 1e-6)
    hf = hn * (1.0 + scale) + shift
    return hf @ params["flin_w"] + params["flin_b"]


# ------------------------- pure-JAX f32 reference (checking) -------------------------
def _ln_ref(v, eps=1e-6):
    mu = jnp.mean(v, axis=-1, keepdims=True)
    var = jnp.mean((v - mu) ** 2, axis=-1, keepdims=True)
    return (v - mu) * jax.lax.rsqrt(var + eps)


def scedit_reference(params, x, t, y):
    H = params["wx"].shape[1]
    depth = params["ada_w"].shape[0]
    freq_dim = params["wt1"].shape[0]
    half = freq_dim // 2
    freqs = jnp.exp(-math.log(10000.0) * jnp.arange(half, dtype=jnp.float32) / half)
    args = t.astype(jnp.float32)[:, None] * freqs[None, :]
    tfreq = jnp.concatenate([jnp.cos(args), jnp.sin(args)], axis=-1)
    yemb = params["y_table"][y]

    xx = x @ params["wx"] + params["bx"] + params["pos"]
    tt = jax.nn.silu(tfreq @ params["wt1"] + params["bt1"]) @ params["wt2"] + params["bt2"]
    cs = jax.nn.silu(tt + yemb)
    for d in range(depth):
        ada = cs @ params["ada_w"][d] + params["ada_b"][d]
        sm, cm, gm, sp, cp, gp = [ada[:, i * H:(i + 1) * H] for i in range(6)]
        h = _ln_ref(xx) * (1.0 + cm) + sm
        qkv = h @ params["qkv_w"][d] + params["qkv_b"][d]
        v = qkv[:, 2 * H:3 * H]                    # softmax over a single key == 1
        xx = xx + gm * (v @ params["proj_w"][d] + params["proj_b"][d])
        h = _ln_ref(xx) * (1.0 + cp) + sp
        h = _gelu_tanh(h @ params["fc1_w"][d] + params["fc1_b"][d])
        xx = xx + gp * (h @ params["fc2_w"][d] + params["fc2_b"][d])
    ada = cs @ params["fada_w"] + params["fada_b"]
    shift, scale = ada[:, :H], ada[:, H:]
    h = _ln_ref(xx) * (1.0 + scale) + shift
    return h @ params["flin_w"] + params["flin_b"]


# --------------------------------- param setup ----------------------------------
def make_params(key, latent_dim, hidden_dim, depth, num_heads, mlp_ratio,
                num_classes, learn_sigma, freq_dim=256):
    assert hidden_dim % num_heads == 0
    H = hidden_dim
    mlp_hidden = int(H * mlp_ratio)
    out_dim = latent_dim * 2 if learn_sigma else latent_dim

    keys = iter(jax.random.split(key, 64))

    def nrm(shape, std=0.02):
        return (std * jax.random.normal(next(keys), shape)).astype(jnp.float32)

    # pos_embed = 1D sin-cos embedding at position 0 -> [sin(0)=0 (H/2), cos(0)=1 (H/2)]
    pos = jnp.concatenate(
        [jnp.zeros((1, H // 2), jnp.float32), jnp.ones((1, H // 2), jnp.float32)], axis=-1)

    params = dict(
        pos=pos,
        y_table=nrm((num_classes + 1, H)),          # +1 CFG null class (dropout > 0)
        wx=nrm((latent_dim, H)), bx=nrm((1, H)),
        wt1=nrm((freq_dim, H)), bt1=nrm((1, H)),
        wt2=nrm((H, H)), bt2=nrm((1, H)),
        ada_w=nrm((depth, H, 6 * H)), ada_b=nrm((depth, 1, 6 * H)),
        qkv_w=nrm((depth, H, 3 * H)), qkv_b=nrm((depth, 1, 3 * H)),
        proj_w=nrm((depth, H, H)), proj_b=nrm((depth, 1, H)),
        fc1_w=nrm((depth, H, mlp_hidden)), fc1_b=nrm((depth, 1, mlp_hidden)),
        fc2_w=nrm((depth, mlp_hidden, H)), fc2_b=nrm((depth, 1, H)),
        fada_w=nrm((H, 2 * H)), fada_b=nrm((1, 2 * H)),
        flin_w=nrm((H, out_dim)), flin_b=nrm((1, out_dim)),
    )
    return params


# ------------------------------------ main ---------------------------------------
if __name__ == "__main__":
    # Small config consistent with SCEDiT(__init__)
    N = 2
    latent_dim = 4
    hidden_dim = 32
    depth = 2
    num_heads = 4
    mlp_ratio = 4.0
    num_classes = 10
    learn_sigma = True

    key = jax.random.PRNGKey(0)
    kp, kx, kt, ky = jax.random.split(key, 4)

    params = make_params(kp, latent_dim, hidden_dim, depth, num_heads,
                         mlp_ratio, num_classes, learn_sigma)

    x = jax.random.normal(kx, (N, latent_dim), dtype=jnp.float32)
    t = jax.random.uniform(kt, (N,), minval=0.0, maxval=1000.0, dtype=jnp.float32)
    y = jax.random.randint(ky, (N,), 0, num_classes, dtype=jnp.int32)

    out = jax.block_until_ready(scedit_forward(params, x, t, y))
    ref = jax.block_until_ready(scedit_reference(params, x, t, y))

    assert out.shape == (N, latent_dim * 2 if learn_sigma else latent_dim)
    # bf16-streamed weights with f32 accumulation -> slightly loosened tolerance vs f32 ref
    assert jnp.allclose(out, ref, atol=1e-2, rtol=1e-2), "mismatch vs JAX reference"

    # TODO(synk): torch.utils.checkpoint (gradient checkpointing) and train-mode label
    # dropout are training-only and are no-ops for this inference forward pass.
    print("KERNEL_OK")
</pallas_src>

<mosaic_0001>
module attributes {stable_mosaic.version = 11 : i64} {
  func.func @_dit_blocks_kernel(%arg0: i32, %arg1: memref<8x128xf32, #tpu.memory_space<vmem>>, %arg2: memref<8x128xf32, #tpu.memory_space<vmem>>, %arg3: memref<1x128xf32, #tpu.memory_space<vmem>>, %arg4: memref<1x128x1024xbf16, #tpu.memory_space<vmem>>, %arg5: memref<1x128x128xbf16, #tpu.memory_space<vmem>>, %arg6: memref<1x1x1152xf32, #tpu.memory_space<vmem>>, %arg7: memref<8x128xf32, #tpu.memory_space<vmem>>) attributes {dimension_semantics = [#tpu.dimension_semantics<arbitrary>], iteration_bounds = array<i64: 2>, scalar_prefetch = 0 : i64, scratch_operands = 0 : i64, tpu.core_type = #tpu.core_type<tc>, window_params = [{pipeline_mode = #tpu.pipeline_mode<synchronous>, transform_indices = @transform_0, window_bounds = array<i64: 8, 128>}, {pipeline_mode = #tpu.pipeline_mode<synchronous>, transform_indices = @transform_1, window_bounds = array<i64: 8, 128>}, {pipeline_mode = #tpu.pipeline_mode<synchronous>, transform_indices = @transform_2, window_bounds = array<i64: 1, 128>}, {transform_indices = @transform_3, window_bounds = array<i64: 1, 128, 1024>}, {transform_indices = @transform_4, window_bounds = array<i64: 1, 128, 128>}, {transform_indices = @transform_5, window_bounds = array<i64: 1, 1, 1152>}, {pipeline_mode = #tpu.pipeline_mode<synchronous>, transform_indices = @transform_6, window_bounds = array<i64: 8, 128>}]} {
    %c0_i32 = arith.constant 0 : i32
    %0 = arith.cmpi eq, %arg0, %c0_i32 : i32
    %1 = arith.extui %0 : i1 to i32
    %c0_i32_0 = arith.constant 0 : i32
    %2 = arith.cmpi ne, %1, %c0_i32_0 : i32
    scf.if %2 {
      %c0_48 = arith.constant 0 : index
      %c0_49 = arith.constant 0 : index
      %106 = vector.load %arg1[%c0_48, %c0_49] : memref<8x128xf32, #tpu.memory_space<vmem>>, vector<8x128xf32>
      %c0_50 = arith.constant 0 : index
      %c0_51 = arith.constant 0 : index
      %107 = vector.load %arg7[%c0_50, %c0_51] : memref<8x128xf32, #tpu.memory_space<vmem>>, vector<8x128xf32>
      tpu.vector_store %arg7[%c0_50, %c0_51], %106 {strides = array<i32>} : memref<8x128xf32, #tpu.memory_space<vmem>>, vector<8x128xf32>,
    } else {
    }
    %c0 = arith.constant 0 : index
    %c0_1 = arith.constant 0 : index
    %3 = vector.load %arg7[%c0, %c0_1] : memref<8x128xf32, #tpu.memory_space<vmem>>, vector<8x128xf32>
    %c0_2 = arith.constant 0 : index
    %c0_3 = arith.constant 0 : index
    %4 = vector.load %arg3[%c0_2, %c0_3] : memref<1x128xf32, #tpu.memory_space<vmem>>, vector<1x128xf32>
    %c0_4 = arith.constant 0 : index
    %c0_5 = arith.constant 0 : index
    %5 = vector.load %arg2[%c0_4, %c0_5] : memref<8x128xf32, #tpu.memory_space<vmem>>, vector<8x128xf32>
    %6 = arith.truncf %5 : vector<8x128xf32> to vector<8x128xbf16>
    %c0_6 = arith.constant 0 : index
    %c0_7 = arith.constant 0 : index
    %c0_8 = arith.constant 0 : index
    %7 = vector.load %arg4[%c0_6, %c0_7, %c0_8] : memref<1x128x1024xbf16, #tpu.memory_space<vmem>>, vector<1x128x768xbf16>
    %8 = vector.shape_cast %7 : vector<1x128x768xbf16> to vector<128x768xbf16>
    %cst = arith.constant dense<0.000000e+00> : vector<8x768xf32>
    %9 = tpu.matmul %6, %8, %cst {dimension_numbers = #tpu.dot_dimension_numbers<[1], [0], [0], [1], [0, 0, 1, 1], [], []>} : vector<8x128xbf16>, vector<128x768xbf16>, vector<8x768xf32> -> vector<8x768xf32>
    %c0_9 = arith.constant 0 : index
    %c0_10 = arith.constant 0 : index
    %c0_11 = arith.constant 0 : index
    %10 = vector.load %arg6[%c0_9, %c0_10, %c0_11] : memref<1x1x1152xf32, #tpu.memory_space<vmem>>, vector<1x1x768xf32>
    %11 = vector.shape_cast %10 : vector<1x1x768xf32> to vector<1x768xf32>
    %12 = vector.broadcast %11 : vector<1x768xf32> to vector<8x768xf32>
    %13 = arith.addf %9, %12 : vector<8x768xf32>
    %14 = vector.extract_strided_slice %13 {offsets = [0, 0], sizes = [8, 128], strides = [1, 1]} : vector<8x768xf32> to vector<8x128xf32>
    %15 = vector.extract_strided_slice %13 {offsets = [0, 128], sizes = [8, 128], strides = [1, 1]} : vector<8x768xf32> to vector<8x128xf32>
    %16 = vector.extract_strided_slice %13 {offsets = [0, 256], sizes = [8, 128], strides = [1, 1]} : vector<8x768xf32> to vector<8x128xf32>
    %17 = vector.extract_strided_slice %13 {offsets = [0, 384], sizes = [8, 128], strides = [1, 1]} : vector<8x768xf32> to vector<8x128xf32>
    %18 = vector.extract_strided_slice %13 {offsets = [0, 512], sizes = [8, 128], strides = [1, 1]} : vector<8x768xf32> to vector<8x128xf32>
    %19 = vector.extract_strided_slice %13 {offsets = [0, 640], sizes = [8, 128], strides = [1, 1]} : vector<8x768xf32> to vector<8x128xf32>
    %cst_12 = arith.constant dense<0.000000e+00> : vector<8xf32>
    %20 = vector.multi_reduction <add>, %3, %cst_12 [1] : vector<8x128xf32> to vector<8xf32>
    %21 = vector.shape_cast %20 : vector<8xf32> to vector<8x1xf32>
    %cst_13 = arith.constant 3.125000e-02 : f32
    %22 = vector.broadcast %cst_13 : f32 to vector<8x1xf32>
    %23 = arith.mulf %21, %22 : vector<8x1xf32>
    %24 = vector.broadcast %23 : vector<8x1xf32> to vector<8x128xf32>
    %25 = arith.subf %3, %24 : vector<8x128xf32>
    %26 = vector.broadcast %4 : vector<1x128xf32> to vector<8x128xf32>
    %27 = arith.mulf %25, %26 : vector<8x128xf32>
    %28 = arith.mulf %27, %27 : vector<8x128xf32>
    %cst_14 = arith.constant dense<0.000000e+00> : vector<8xf32>
    %29 = vector.multi_reduction <add>, %28, %cst_14 [1] : vector<8x128xf32> to vector<8xf32>
    %30 = vector.shape_cast %29 : vector<8xf32> to vector<8x1xf32>
    %cst_15 = arith.constant 3.125000e-02 : f32
    %31 = vector.broadcast %cst_15 : f32 to vector<8x1xf32>
    %32 = arith.mulf %30, %31 : vector<8x1xf32>
    %cst_16 = arith.constant 9.99999997E-7 : f32
    %33 = vector.broadcast %cst_16 : f32 to vector<8x1xf32>
    %34 = arith.addf %32, %33 : vector<8x1xf32>
    %35 = math.rsqrt %34 : vector<8x1xf32>
    %36 = vector.broadcast %35 : vector<8x1xf32> to vector<8x128xf32>
    %37 = arith.mulf %27, %36 : vector<8x128xf32>
    %cst_17 = arith.constant 1.000000e+00 : f32
    %38 = vector.broadcast %cst_17 : f32 to vector<8x128xf32>
    %39 = arith.addf %38, %15 : vector<8x128xf32>
    %40 = arith.mulf %37, %39 : vector<8x128xf32>
    %41 = arith.addf %40, %14 : vector<8x128xf32>
    %42 = arith.truncf %41 : vector<8x128xf32> to vector<8x128xbf16>
    %c0_18 = arith.constant 0 : index
    %c0_19 = arith.constant 0 : index
    %c768 = arith.constant 768 : index
    %43 = vector.load %arg4[%c0_18, %c0_19, %c768] : memref<1x128x1024xbf16, #tpu.memory_space<vmem>>, vector<1x128x128xbf16>
    %44 = vector.shape_cast %43 : vector<1x128x128xbf16> to vector<128x128xbf16>
    %cst_20 = arith.constant dense<0.000000e+00> : vector<8x128xf32>
    %45 = tpu.matmul %42, %44, %cst_20 {dimension_numbers = #tpu.dot_dimension_numbers<[1], [0], [0], [1], [0, 0, 1, 1], [], []>} : vector<8x128xbf16>, vector<128x128xbf16>, vector<8x128xf32> -> vector<8x128xf32>
    %c0_21 = arith.constant 0 : index
    %c0_22 = arith.constant 0 : index
    %c768_23 = arith.constant 768 : index
    %46 = vector.load %arg6[%c0_21, %c0_22, %c768_23] : memref<1x1x1152xf32, #tpu.memory_space<vmem>>, vector<1x1x128xf32>
    %47 = vector.shape_cast %46 : vector<1x1x128xf32> to vector<1x128xf32>
    %48 = vector.broadcast %47 : vector<1x128xf32> to vector<8x128xf32>
    %49 = arith.addf %45, %48 : vector<8x128xf32>
    %50 = arith.mulf %16, %49 : vector<8x128xf32>
    %51 = arith.addf %3, %50 : vector<8x128xf32>
    %cst_24 = arith.constant dense<0.000000e+00> : vector<8xf32>
    %52 = vector.multi_reduction <add>, %51, %cst_24 [1] : vector<8x128xf32> to vector<8xf32>
    %53 = vector.shape_cast %52 : vector<8xf32> to vector<8x1xf32>
    %cst_25 = arith.constant 3.125000e-02 : f32
    %54 = vector.broadcast %cst_25 : f32 to vector<8x1xf32>
    %55 = arith.mulf %53, %54 : vector<8x1xf32>
    %56 = vector.broadcast %55 : vector<8x1xf32> to vector<8x128xf32>
    %57 = arith.subf %51, %56 : vector<8x128xf32>
    %58 = vector.broadcast %4 : vector<1x128xf32> to vector<8x128xf32>
    %59 = arith.mulf %57, %58 : vector<8x128xf32>
    %60 = arith.mulf %59, %59 : vector<8x128xf32>
    %cst_26 = arith.constant dense<0.000000e+00> : vector<8xf32>
    %61 = vector.multi_reduction <add>, %60, %cst_26 [1] : vector<8x128xf32> to vector<8xf32>
    %62 = vector.shape_cast %61 : vector<8xf32> to vector<8x1xf32>
    %cst_27 = arith.constant 3.125000e-02 : f32
    %63 = vector.broadcast %cst_27 : f32 to vector<8x1xf32>
    %64 = arith.mulf %62, %63 : vector<8x1xf32>
    %cst_28 = arith.constant 9.99999997E-7 : f32
    %65 = vector.broadcast %cst_28 : f32 to vector<8x1xf32>
    %66 = arith.addf %64, %65 : vector<8x1xf32>
    %67 = math.rsqrt %66 : vector<8x1xf32>
    %68 = vector.broadcast %67 : vector<8x1xf32> to vector<8x128xf32>
    %69 = arith.mulf %59, %68 : vector<8x128xf32>
    %cst_29 = arith.constant 1.000000e+00 : f32
    %70 = vector.broadcast %cst_29 : f32 to vector<8x128xf32>
    %71 = arith.addf %70, %18 : vector<8x128xf32>
    %72 = arith.mulf %69, %71 : vector<8x128xf32>
    %73 = arith.addf %72, %17 : vector<8x128xf32>
    %74 = arith.truncf %73 : vector<8x128xf32> to vector<8x128xbf16>
    %c0_30 = arith.constant 0 : index
    %c0_31 = arith.constant 0 : index
    %c896 = arith.constant 896 : index
    %75 = vector.load %arg4[%c0_30, %c0_31, %c896] : memref<1x128x1024xbf16, #tpu.memory_space<vmem>>, vector<1x128x128xbf16>
    %76 = vector.shape_cast %75 : vector<1x128x128xbf16> to vector<128x128xbf16>
    %cst_32 = arith.constant dense<0.000000e+00> : vector<8x128xf32>
    %77 = tpu.matmul %74, %76, %cst_32 {dimension_numbers = #tpu.dot_dimension_numbers<[1], [0], [0], [1], [0, 0, 1, 1], [], []>} : vector<8x128xbf16>, vector<128x128xbf16>, vector<8x128xf32> -> vector<8x128xf32>
    %c0_33 = arith.constant 0 : index
    %c0_34 = arith.constant 0 : index
    %c896_35 = arith.constant 896 : index
    %78 = vector.load %arg6[%c0_33, %c0_34, %c896_35] : memref<1x1x1152xf32, #tpu.memory_space<vmem>>, vector<1x1x128xf32>
    %79 = vector.shape_cast %78 : vector<1x1x128xf32> to vector<1x128xf32>
    %80 = vector.broadcast %79 : vector<1x128xf32> to vector<8x128xf32>
    %81 = arith.addf %77, %80 : vector<8x128xf32>
    %cst_36 = arith.constant 5.000000e-01 : f32
    %82 = vector.broadcast %cst_36 : f32 to vector<8x128xf32>
    %83 = arith.mulf %82, %81 : vector<8x128xf32>
    %cst_37 = arith.constant 4.471500e-02 : f32
    %84 = vector.broadcast %cst_37 : f32 to vector<8x128xf32>
    %85 = arith.mulf %84, %81 : vector<8x128xf32>
    %86 = arith.mulf %85, %81 : vector<8x128xf32>
    %87 = arith.mulf %86, %81 : vector<8x128xf32>
    %88 = arith.addf %81, %87 : vector<8x128xf32>
    %cst_38 = arith.constant 0.797884583 : f32
    %89 = vector.broadcast %cst_38 : f32 to vector<8x128xf32>
    %90 = arith.mulf %89, %88 : vector<8x128xf32>
    %91 = math.tanh %90 : vector<8x128xf32>
    %cst_39 = arith.constant 1.000000e+00 : f32
    %92 = vector.broadcast %cst_39 : f32 to vector<8x128xf32>
    %93 = arith.addf %92, %91 : vector<8x128xf32>
    %94 = arith.mulf %83, %93 : vector<8x128xf32>
    %95 = arith.truncf %94 : vector<8x128xf32> to vector<8x128xbf16>
    %c0_40 = arith.constant 0 : index
    %c0_41 = arith.constant 0 : index
    %c0_42 = arith.constant 0 : index
    %96 = vector.load %arg5[%c0_40, %c0_41, %c0_42] : memref<1x128x128xbf16, #tpu.memory_space<vmem>>, vector<1x128x128xbf16>
    %97 = vector.shape_cast %96 : vector<1x128x128xbf16> to vector<128x128xbf16>
    %cst_43 = arith.constant dense<0.000000e+00> : vector<8x128xf32>
    %98 = tpu.matmul %95, %97, %cst_43 {dimension_numbers = #tpu.dot_dimension_numbers<[1], [0], [0], [1], [0, 0, 1, 1], [], []>} : vector<8x128xbf16>, vector<128x128xbf16>, vector<8x128xf32> -> vector<8x128xf32>
    %c0_44 = arith.constant 0 : index
    %c0_45 = arith.constant 0 : index
    %c1024 = arith.constant 1024 : index
    %99 = vector.load %arg6[%c0_44, %c0_45, %c1024] : memref<1x1x1152xf32, #tpu.memory_space<vmem>>, vector<1x1x128xf32>
    %100 = vector.shape_cast %99 : vector<1x1x128xf32> to vector<1x128xf32>
    %101 = vector.broadcast %100 : vector<1x128xf32> to vector<8x128xf32>
    %102 = arith.addf %98, %101 : vector<8x128xf32>
    %103 = arith.mulf %19, %102 : vector<8x128xf32>
    %104 = arith.addf %51, %103 : vector<8x128xf32>
    %c0_46 = arith.constant 0 : index
    %c0_47 = arith.constant 0 : index
    %105 = vector.load %arg7[%c0_46, %c0_47] : memref<8x128xf32, #tpu.memory_space<vmem>>, vector<8x128xf32>
    tpu.vector_store %arg7[%c0_46, %c0_47], %104 {strides = array<i32>} : memref<8x128xf32, #tpu.memory_space<vmem>>, vector<8x128xf32>,
    return
  }
  func.func @transform_0(%arg0: i32) -> (i32, i32) {
    %c0_i32 = arith.constant 0 : i32
    %c0_i32_0 = arith.constant 0 : i32
    %c0_i32_1 = arith.constant 0 : i32
    return %c0_i32, %c0_i32_0 : i32, i32
  }
  func.func @transform_1(%arg0: i32) -> (i32, i32) {
    %c0_i32 = arith.constant 0 : i32
    %c0_i32_0 = arith.constant 0 : i32
    %c0_i32_1 = arith.constant 0 : i32
    return %c0_i32, %c0_i32_0 : i32, i32
  }
  func.func @transform_2(%arg0: i32) -> (i32, i32) {
    %c0_i32 = arith.constant 0 : i32
    %c0_i32_0 = arith.constant 0 : i32
    %c0_i32_1 = arith.constant 0 : i32
    return %c0_i32, %c0_i32_0 : i32, i32
  }
  func.func @transform_3(%arg0: i32) -> (i32, i32, i32) {
    %c0_i32 = arith.constant 0 : i32
    %c0_i32_0 = arith.constant 0 : i32
    %c0_i32_1 = arith.constant 0 : i32
    return %arg0, %c0_i32, %c0_i32_0 : i32, i32, i32
  }
  func.func @transform_4(%arg0: i32) -> (i32, i32, i32) {
    %c0_i32 = arith.constant 0 : i32
    %c0_i32_0 = arith.constant 0 : i32
    %c0_i32_1 = arith.constant 0 : i32
    return %arg0, %c0_i32, %c0_i32_0 : i32, i32, i32
  }
  func.func @transform_5(%arg0: i32) -> (i32, i32, i32) {
    %c0_i32 = arith.constant 0 : i32
    %c0_i32_0 = arith.constant 0 : i32
    %c0_i32_1 = arith.constant 0 : i32
    return %arg0, %c0_i32, %c0_i32_0 : i32, i32, i32
  }
  func.func @transform_6(%arg0: i32) -> (i32, i32) {
    %c0_i32 = arith.constant 0 : i32
    %c0_i32_0 = arith.constant 0 : i32
    %c0_i32_1 = arith.constant 0 : i32
    return %c0_i32, %c0_i32_0 : i32, i32
  }
}

</mosaic_0001>

<bundles_post_ra>
// kernel: tpu_custom_call.1
= control target key start
LH: loop header
LB: loop body
LE: loop exit
PB: predicated region body
PF: predicated region fallthrough
CT: control target
= control target key end

     0   :  { %s2249_s0 = inlined_call_operand.hbm [shape: f32[8,128], index: 0, kind: input, shape index: {}]   ;;  %s2250_s1 = inlined_call_operand.hbm [shape: f32[8,128], index: 1, kind: input, shape index: {}]   ;;  %s2251_s2 = inlined_call_operand.vmem [shape: f32[1,128], index: 2, kind: input, shape index: {}]   ;;  %s2252_s3 = inlined_call_operand.hbm [shape: bf16[2,128,1024], index: 3, kind: input, shape index: {}]   ;;  %s2253_s4 = inlined_call_operand.hbm [shape: bf16[2,128,128], index: 4, kind: input, shape index: {}]   ;;  %s2254_s5 = inlined_call_operand.hbm [shape: f32[2,1,1152], index: 5, kind: input, shape index: {}]   ;;  %s2255_s6 = inlined_call_operand.hbm [shape: f32[8,128], index: 6, kind: output, shape index: {}]  }
   0x1   :  { %2262 = sst [smem:[#allocation15_spill]] %s2249_s0 }
   0x2   :  { %11 = vsyncpa [#allocation3], 0 }
   0x3   :  { %12 = vsyncpa [#allocation6], 0 }
   0x4   :  { %13 = vsyncpa [#allocation4], 0  ;;  %s1853_s21 = smov 0   ;;  %s1855_s22 = smov 0  }
   0x5   :  { %s1857_s23 = smov 0   ;;  %s1859_s24 = smov 0  }
   0x6 LB: > { %s1872_s25 = sadd.s32 4294967295, %s1803_s24   ;;  %s1875_s26 = sadd.s32 1, %s1803_s24   ;;  %s1803_s24 = sphi %s1859_s24, %s2282_s24   ;;  %s1799_s23 = sphi %s1857_s23, %s2281_s23   ;;  %s1795_s22 = sphi %s1855_s22, %s2280_s22   ;;  %s1791_s21 = sphi %s1853_s21, %s2279_s21  }
   0x7   : > { %s86_s27 = ssub.s32 %s1803_s24, %s1875_s26  ;;  %s89_s28 = sadd.s32 1, %s1799_s23 }
   0x8   : > { %p87_p0 = scmp.eq.s32.totalorder %s86_s27, 0  ;;  %p96_p1 = scmp.ne.s32.totalorder %s1799_s23, %s1795_s22 }
   0x9   : > { %p97_p2 = scmp.eq.s32.totalorder %s1803_s24, 0  ;;  %p102_p3 = scmp.ne.s32.totalorder %s1795_s22, %s1791_s21 }
   0xa   : > { %s1885_s29 = scalar_select %p87_p0, %s1799_s23, %s89_s28  }
   0xb   : > { %p1887_p4 = por %p97_p2, %p96_p1  ;;  %p2256_p5 = scmp.eq.s32.totalorder %s1872_s25, 0 }
   0xc   : > { %p1310_p6 = scmp.ge.s32.totalorder %s1803_s24, 1  ;;  %p186_p7 = scmp.lt.s32.totalorder %s1803_s24, 3 }
   0xd   : > { %p1896_p8 = por %p2256_p5, %p102_p3  ;;  %s1805_s9 = smov [#allocation2]  }
   0xe   : > { %p1901_p10 = pnand %p1310_p6, %p186_p7  ;;  %s199_s10 = sshll.u32 %s1805_s9, 4  ;;  %s200_s10 = int_to_ptr.vmem [resolvable:$true] %s199_s10 }
   0xf   : > { %s2264_s7 = scalar_select %p1896_p8, 1, 0 }
  0x10   : > { %s2265_s8 = scalar_select %p1901_p10, 1, 0 }
  0x11   : > { %p1517_p11 = pneg %p1901_p10  ;;  %p1536_p12 = scmp.lt.s32.totalorder %s1803_s24, 2 }
  0x12   : > { %s224_s11 = sand.u32 1, %s1803_s24   ;;  %s1922_s14 = sand.u32 1, %s1799_s23  }
  0x13   : > { %p1911_p13 = pnand %p1517_p11, %p2256_p5  ;;  %p1917_p0 = pnand %p1536_p12, %p1887_p4 }
  0x14   : > { %s1314_s15 = sshll.u32 %s1922_s14, 9  ;;  %s1608_s16 = scalar_lea.vmem %s200_s10, 128 }
  0x15   : > { %s2266_s12 = scalar_select %p1911_p13, 1, 0 }
  0x16   : > { %p2257_p1 = pneg %p1911_p13  ;;  %p1609_p2 = scmp.ne.s32.totalorder %s200_s10, %s1608_s16 }
  0x17   : > { %p1616_p7 = scmp.lt.s32.totalorder %s200_s10, %s200_s10  ;;  %p1617_p11 = scmp.lt.s32.totalorder %s1608_s16, %s1608_s16 }
  0x18   : > { %p1611_p3 = pnand %p1609_p2, %p2257_p1 }
  0x19   : > { %p1618_p9 = por %p1617_p11, %p1616_p7 }
  0x1a   : > { %p1612_p6 = pneg %p1611_p3 }
  0x1c   : > { %p1619_p5 = pnand %p1618_p9, %p1612_p6 }
  0x1e   : > { %1622 = shalt.err (!%p1619_p5)
}
  0x1f   : > { %s2268_s0 = sld [smem:[#allocation15_spill]]  ;;  %s1407_s19 = sshll.u32 %s1803_s24, 13 }
  0x20   : > { %s228_s20 = scalar_lea.vmem [#allocation7], %s1314_s15  ;;  %s1939_s30 = scalar_lea.hbm %s2252_s3, %s1407_s19 }
  0x21   : > { %s235_s21 = sshll.u32 %s228_s20, 4  ;;  %s1943_s9 = scalar_lea.sflag [#allocation3], %s224_s11  ;;  %s1941_s21 = int_to_ptr.vmem [resolvable:$true] %s235_s21 }
  0x22   : > { %s1623_s16 = scalar_lea.hbm %s1939_s30, 8192  ;;  %p1949_p5 = pneg %p1917_p0 }
  0x23   : > { %p1624_p4 = scmp.ne.s32.totalorder %s1939_s30, %s1623_s16  ;;  %s1628_s18 = scalar_lea.hbm %s2252_s3, 16384 }
  0x24   : > { %p1629_p2 = scmp.lt.s32.totalorder %s1939_s30, %s2252_s3  ;;  %p1630_p3 = scmp.lt.s32.totalorder %s1628_s18, %s1623_s16 }
  0x25   : > { %1520 = dma.hbm_to_vmem [thread:$0]  (!%p1911_p13), %s2268_s0, 128, %s200_s10, [#allocation3]  }
  0x26   : > { %p1626_p9 = pnand %p1949_p5, %p1624_p4  ;;  %p1631_p6 = por %p1630_p3, %p1629_p2 }
  0x28   : > { %p1627_p12 = pneg %p1626_p9 }
  0x2a   : > { %p1632_p7 = pnand %p1631_p6, %p1627_p12 }
  0x2c   : > { %1635 = shalt.err (!%p1632_p7)
}
  0x2d   : > { %s1636_s11 = scalar_lea.vmem %s1941_s21, 8192  ;;  %s1806_s27 = smov [#allocation7]  }
  0x2e   : > { %p1637_p11 = scmp.ne.s32.totalorder %s1941_s21, %s1636_s11  ;;  %s1641_s28 = sshll.u32 %s1806_s27, 4  ;;  %s1642_s28 = int_to_ptr.vmem [resolvable:$false] %s1641_s28 }
  0x2f   : > { %s1643_s15 = scalar_lea.vmem %s1642_s28, 16384  ;;  %p1644_p1 = scmp.lt.s32.totalorder %s1941_s21, %s1642_s28 }
  0x30   : > { %p1639_p4 = pnand %p1637_p11, %p1949_p5  ;;  %p1645_p8 = scmp.lt.s32.totalorder %s1643_s15, %s1636_s11 }
  0x32   : > { %p1640_p9 = pneg %p1639_p4  ;;  %p1646_p10 = por %p1645_p8, %p1644_p1 }
  0x34   : > { %p1647_p13 = pnand %p1646_p10, %p1640_p9 }
  0x36   : > { %1650 = shalt.err (!%p1647_p13)
}
  0x37   : > { %s1807_s16 = smov 512   ;;  %s1808_s17 = smov 32  }
  0x38   : > { %1527 = dma.hbm_to_vmem [thread:$0]  (!%p1917_p0), %s1939_s30, 8192, %s1941_s21, %s1943_s9, %s1807_s16, %s1807_s16, %s1808_s17  }
  0x39   : > { %s1317_s18 = sshll.u32 %s1922_s14, 6  ;;  %s1408_s19 = sshll.u32 %s1803_s24, 10 }
  0x3a   : > { %s1977_s11 = scalar_lea.hbm %s2253_s4, %s1408_s19  ;;  %s249_s28 = scalar_lea.vmem [#allocation8], %s1317_s18 }
  0x3b   : > { %s256_s15 = sshll.u32 %s249_s28, 4  ;;  %s1651_s0 = scalar_lea.hbm %s1977_s11, 1024  ;;  %s1979_s15 = int_to_ptr.vmem [resolvable:$true] %s256_s15 }
  0x3c   : > { %p1652_p8 = scmp.ne.s32.totalorder %s1977_s11, %s1651_s0  ;;  %s1656_s16 = scalar_lea.hbm %s2253_s4, 2048 }
  0x3d   : > { %p1657_p1 = scmp.lt.s32.totalorder %s1977_s11, %s2253_s4  ;;  %p1658_p12 = scmp.lt.s32.totalorder %s1656_s16, %s1651_s0 }
  0x3e   : > { %p1654_p10 = pnand %p1652_p8, %p1949_p5 }
  0x3f   : > { %p1659_p2 = por %p1658_p12, %p1657_p1 }
  0x40   : > { %p1655_p13 = pneg %p1654_p10 }
  0x42   : > { %p1660_p3 = pnand %p1659_p2, %p1655_p13 }
  0x44   : > { %1663 = shalt.err (!%p1660_p3)
}
  0x45   : > { %s1664_s18 = scalar_lea.vmem %s1979_s15, 1024  ;;  %s1809_s19 = smov [#allocation8]  }
  0x46   : > { %p1665_p6 = scmp.ne.s32.totalorder %s1979_s15, %s1664_s18  ;;  %s1669_s27 = sshll.u32 %s1809_s19, 4  ;;  %s1670_s27 = int_to_ptr.vmem [resolvable:$false] %s1669_s27 }
  0x47   : > { %s1671_s28 = scalar_lea.vmem %s1670_s27, 2048  ;;  %p1672_p4 = scmp.lt.s32.totalorder %s1979_s15, %s1670_s27 }
  0x48   : > { %p1667_p7 = pnand %p1665_p6, %p1949_p5  ;;  %p1673_p9 = scmp.lt.s32.totalorder %s1671_s28, %s1664_s18 }
  0x4a   : > { %p1668_p11 = pneg %p1667_p7  ;;  %p1674_p8 = por %p1673_p9, %p1672_p4 }
  0x4c   : > { %p1675_p10 = pnand %p1674_p8, %p1668_p11 }
  0x4e   : > { %1678 = shalt.err (!%p1675_p10)
}
  0x4f   : > { %s1810_s0 = smov 64   ;;  %s1811_s21 = smov 4  }
  0x50   : > { %1530 = dma.hbm_to_vmem [thread:$0]  (!%p1917_p0), %s1977_s11, 1024, %s1979_s15, %s1943_s9, %s1810_s0, %s1810_s0, %s1811_s21  }
  0x51   : > { %s1496_s30 = smul.u32 9, %s1922_s14  ;;  %s1812_s16 = smov [#allocation5]  }
  0x52   : > { %s210_s17 = sshll.u32 %s1812_s16, 4  ;;  %s1497_s20 = smul.u32 144, %s1803_s24  ;;  %s211_s17 = int_to_ptr.vmem [resolvable:$true] %s210_s17 }
  0x53   : > { %s1690_s18 = scalar_lea.vmem %s211_s17, 128  ;;  %p2270_p1 = scmp.ne.s32.totalorder %s2266_s12, 0 }
  0x54   : > { %p1691_p13 = scmp.ne.s32.totalorder %s211_s17, %s1690_s18  ;;  %p1698_p6 = scmp.lt.s32.totalorder %s211_s17, %s211_s17 }
  0x55   : > { %p2271_p12 = pneg %p2270_p1  ;;  %p1699_p7 = scmp.lt.s32.totalorder %s1690_s18, %s1690_s18 }
  0x57   : > { %p1693_p2 = pnand %p1691_p13, %p2271_p12  ;;  %p1700_p11 = por %p1699_p7, %p1698_p6 }
  0x59   : > { %p1694_p3 = pneg %p1693_p2 }
  0x5b   : > { %p1701_p4 = pnand %p1700_p11, %p1694_p3 }
  0x5d   : > { %1704 = shalt.err (!%p1701_p4)
}
  0x5e   : > { %1523 = dma.hbm_to_vmem [thread:$0]  (!%p2270_p1), %s2250_s1, 128, %s211_s17, [#allocation6]  }
  0x5f   : > { %s276_s15 = scalar_lea.hbm %s2254_s5, %s1497_s20  ;;  %s270_s27 = scalar_lea.vmem [#allocation9], %s1496_s30 }
  0x60   : > { %s278_s28 = sshll.u32 %s270_s27, 4  ;;  %s1705_s0 = scalar_lea.hbm %s276_s15, 144  ;;  %s279_s28 = int_to_ptr.vmem [resolvable:$true] %s278_s28 }
  0x61   : > { %p1706_p9 = scmp.ne.s32.totalorder %s276_s15, %s1705_s0  ;;  %s1710_s12 = scalar_lea.hbm %s2254_s5, 288 }
  0x62   : > { %p1711_p13 = scmp.lt.s32.totalorder %s276_s15, %s2254_s5  ;;  %p1712_p1 = scmp.lt.s32.totalorder %s1710_s12, %s1705_s0 }
  0x63   : > { %p1708_p8 = pnand %p1706_p9, %p1949_p5 }
  0x64   : > { %p1713_p12 = por %p1712_p1, %p1711_p13 }
  0x65   : > { %p1709_p10 = pneg %p1708_p8 }
  0x67   : > { %p1714_p2 = pnand %p1713_p12, %p1709_p10 }
  0x69   : > { %1717 = shalt.err (!%p1714_p2)
}
  0x6a   : > { %s1718_s30 = scalar_lea.vmem %s279_s28, 144  ;;  %s1813_s17 = smov [#allocation9]  }
  0x6b   : > { %p1719_p3 = scmp.ne.s32.totalorder %s279_s28, %s1718_s30  ;;  %s1723_s20 = sshll.u32 %s1813_s17, 4  ;;  %s1724_s20 = int_to_ptr.vmem [resolvable:$false] %s1723_s20 }
  0x6c   : > { %s1725_s11 = scalar_lea.vmem %s1724_s20, 288  ;;  %p1726_p11 = scmp.lt.s32.totalorder %s279_s28, %s1724_s20 }
  0x6d   : > { %p1721_p6 = pnand %p1719_p3, %p1949_p5  ;;  %p1727_p4 = scmp.lt.s32.totalorder %s1725_s11, %s1718_s30 }
  0x6f   : > { %p1722_p7 = pneg %p1721_p6  ;;  %p1728_p9 = por %p1727_p4, %p1726_p11 }
  0x71   : > { %p1729_p8 = pnand %p1728_p9, %p1722_p7 }
  0x73   : > { %1732 = shalt.err (!%p1729_p8)
}
  0x74   : > { %1533 = dma.hbm_to_vmem [thread:$0]  (!%p1917_p0), %s276_s15, 144, %s279_s28, %s1943_s9  }
  0x75   : > { %p2272_p10 = scmp.ne.s32.totalorder %s2265_s8, 0 }
  0x76   : > { %p2273_p13 = scmp.eq.s32.totalorder (!%p2272_p10), %s1872_s25, 0 }
  0x77   : > { %287 = sbr.rel (%p2272_p10) target bundleno = 1399 (0x577), region = 44 }
  0x7c   : > { %1774 = dma.done.wait (%p2273_p13), [#allocation3], 128   ;;  %p2274_p5 = pmov %p2273_p13 }
  0x7e   : > { %1776 = vsyncadd (%p2274_p5), [#allocation3], 4294967168  ;;  %p2275_p1 = pmov %p2274_p5 }
  0x80   : > { %1778 = dma.done.wait (%p2275_p1), [#allocation6], 128   ;;  %p2276_p12 = pmov %p2275_p1 }
  0x81   : > { %s297_s13 = sand.u32 1, %s1872_s25   ;;  %s299_s9 = sand.u32 1, %s1795_s22  }
  0x82   : > { %1780 = vsyncadd (%p2276_p12), [#allocation6], 4294967168  ;;  %s1324_s10 = sshll.u32 %s299_s9, 9  ;;  %s298_s8 = scalar_lea.sflag [#allocation3], %s297_s13 }
  0x83   : > { %s2040_s24 = scalar_lea.vmem [#allocation7], %s1324_s10  ;;  %p2277_p0 = scmp.ne.s32.totalorder %s2264_s7, 0 }
  0x85   : > { %1782 = dma.done.wait (%p2277_p0), %s298_s8, 9360  }
  0x86   : > { %1784 = vsyncadd (%p2277_p0), %s298_s8, 4294957936  ;;  %s1325_s14 = sshll.u32 %s299_s9, 6  ;;  %s1498_s15 = smul.u32 9, %s299_s9 }
  0x87   : > { %s2046_s27 = scalar_lea.vmem [#allocation8], %s1325_s14  ;;  %p2278_p2 = scmp.ne.s32.totalorder %s1872_s25, 0 }
  0x88   : > { %s2048_s28 = scalar_lea.vmem [#allocation9], %s1498_s15 }
  0x89   : > { %357 = sbr.rel (%p2278_p2) target bundleno = 144 (0x90), region = 68 }
  0x8e   : > { %v358_v0 = vld [vmem:[#allocation2] sm:$0xff] }
  0x8f   : > { %359 = vst [vmem:[#allocation10] sm:$0xff] %v358_v0 }
  0x90 PF: > { %v406_v2 = vld [vmem:[%s2040_s24 + $0x1c0] sm:$0xff]  ;;  %v1814_v8 = vmov 0   ;;  %v407_v28 = vld [vmem:[%s2040_s24 + $0x1c8] sm:$0xff]  ;;  %v362_v49 = vld [vmem:[#allocation5] sm:$0xff]  ;;  %vm1816_vm0 = vmmov 0   ;;  %s1817_s21 = smov [#allocation10]  }
  0x91   : > { %v409_v3 = vld [vmem:[%s2040_s24 + $0x1e0] sm:$0xff]  ;;  %716 = vmatprep.mubr.bf16.mxu0 %v1814_v8  ;;  %757 = vmatprep.mubr.bf16.mxu1 %v1814_v8  ;;  %v410_v29 = vld [vmem:[%s2040_s24 + $0x1e8] sm:$0xff]  ;;  %v2083_v53 = vpack.c.bf16 %v362_v49, %v362_v49  ;;  %s1200_s16 = sshll.u32 %s1817_s21, 4  ;;  %p1539_p3 = scmp.eq.s32.totalorder %s1872_s25, 1  ;;  %s1201_s16 = int_to_ptr.vmem [resolvable:$true] %s1200_s16 }
  0x92   : > { %v1370_v4 = vcombine.high %v406_v2, %v409_v3  ;;  %v1369_v5 = vcombine.low %v406_v2, %v409_v3  ;;  %v400_v6 = vld [vmem:[%s2040_s24 + $0x180] sm:$0xff]  ;;  %v401_v30 = vld [vmem:[%s2040_s24 + $0x188] sm:$0xff]  ;;  %v1372_v32 = vcombine.high %v407_v28, %v410_v29  ;;  %v1371_v33 = vcombine.low %v407_v28, %v410_v29  ;;  %v833_v28 = vld [vmem:[%s2040_s24 + $0x98] sm:$0xf]  ;;  %s1733_s12 = scalar_lea.vmem %s1201_s16, 128  ;;  %p1740_p4 = scmp.lt.s32.totalorder %s1201_s16, %s1201_s16 }
  0x93   : > { %v403_v7 = vld [vmem:[%s2040_s24 + $0x1a0] sm:$0xff]  ;;  %v404_v34 = vld [vmem:[%s2040_s24 + $0x1a8] sm:$0xff]  ;;  %v834_v29 = vld [vmem:[%s2040_s24 + $0xb8] sm:$0xf]  ;;  %p1734_p6 = scmp.ne.s32.totalorder %s1201_s16, %s1733_s12  ;;  %p1741_p9 = scmp.lt.s32.totalorder %s1733_s12, %s1733_s12 }
  0x94   : > { %v1364_v9 = vcombine.high %v400_v6, %v403_v7  ;;  %v394_v10 = vld [vmem:[%s2040_s24 + $0x140] sm:$0xff]  ;;  %684 = vmatprep.subr.bf16.mxu0 %v1370_v4  ;;  %v1363_v12 = vcombine.low %v400_v6, %v403_v7  ;;  %v1366_v36 = vcombine.high %v401_v30, %v404_v34  ;;  %v395_v37 = vld [vmem:[%s2040_s24 + $0x148] sm:$0xff]  ;;  %725 = vmatprep.subr.bf16.mxu1 %v1372_v32  ;;  %v843_v6 = vld [vmem:[%s2040_s24 + $0x1d8] sm:$0xf] }
  0x95   : > { %v397_v11 = vld [vmem:[%s2040_s24 + $0x160] sm:$0xff]  ;;  %685 = vmatpush1.bf16.msra.mxu0 %v1369_v5  ;;  %v398_v38 = vld [vmem:[%s2040_s24 + $0x168] sm:$0xff]  ;;  %726 = vmatpush1.bf16.msra.mxu1 %v1371_v33  ;;  %v1365_v41 = vcombine.low %v401_v30, %v404_v34  ;;  %v844_v7 = vld [vmem:[%s2040_s24 + $0x1f8] sm:$0xf]  ;;  %v1379_v30 = vcombine.low %v833_v28, %v834_v29  ;;  %p1735_p7 = pnand %p1734_p6, %p1539_p3  ;;  %p1742_p8 = por %p1741_p9, %p1740_p4 }
  0x96   : > { %v2052_v1 = vld [vmem:[#allocation10] sm:$0xff]  ;;  %686 = vmatprep.subr.bf16.mxu0 %v1364_v9  ;;  %v1358_v13 = vcombine.high %v394_v10, %v397_v11  ;;  %v388_v14 = vld [vmem:[%s2040_s24 + $0x100] sm:$0xff]  ;;  %v1357_v16 = vcombine.low %v394_v10, %v397_v11  ;;  %727 = vmatprep.subr.bf16.mxu1 %v1366_v36  ;;  %v1360_v43 = vcombine.high %v395_v37, %v398_v38  ;;  %v389_v45 = vld [vmem:[%s2040_s24 + $0x108] sm:$0xff]  ;;  %v1815_v9 = vmov 0.0  }
  0x97   : > { %807 = vadd.xlane.f32.xlu0 %v2052_v1  ;;  %v391_v15 = vld [vmem:[%s2040_s24 + $0x120] sm:$0xff]  ;;  %v392_v46 = vld [vmem:[%s2040_s24 + $0x128] sm:$0xff]  ;;  %v1359_v47 = vcombine.low %v395_v37, %v398_v38  ;;  %v841_v10 = vld [vmem:[%s2040_s24 + $0x198] sm:$0xf]  ;;  %p1736_p11 = pneg %p1735_p7 }
  0x98   : > { %v382_v17 = vld [vmem:[%s2040_s24 + $0xc0] sm:$0xff]  ;;  %v1352_v19 = vcombine.high %v388_v14, %v391_v15  ;;  %v1351_v20 = vcombine.low %v388_v14, %v391_v15  ;;  %v1354_v50 = vcombine.high %v389_v45, %v392_v46  ;;  %v383_v51 = vld [vmem:[%s2040_s24 + $0xc8] sm:$0xff]  ;;  %v1353_v54 = vcombine.low %v389_v45, %v392_v46  ;;  %v842_v11 = vld [vmem:[%s2040_s24 + $0x1b8] sm:$0xf] }
  0x99   : > { %687 = vmatpush1.bf16.msra.mxu0 %v1363_v12  ;;  %v385_v18 = vld [vmem:[%s2040_s24 + $0xe0] sm:$0xff]  ;;  %728 = vmatpush1.bf16.msra.mxu1 %v1365_v41  ;;  %v386_v52 = vld [vmem:[%s2040_s24 + $0xe8] sm:$0xff]  ;;  %v1383_v12 = vcombine.low %v841_v10, %v842_v11  ;;  %v2104_v15 = vld [vmem:[%s2251_s2] ss:$0 sm:$0xff]  ;;  %v414_v45 = vlaneseq  ;;  %p1743_p10 = pnand %p1742_p8, %p1736_p11 }
  0x9a   : > { %688 = vmatprep.subr.bf16.mxu0 %v1358_v13  ;;  %v1346_v21 = vcombine.high %v382_v17, %v385_v18  ;;  %v376_v22 = vld [vmem:[%s2040_s24 + $0x80] sm:$0xff]  ;;  %v1345_v24 = vcombine.low %v382_v17, %v385_v18  ;;  %729 = vmatprep.subr.bf16.mxu1 %v1360_v43  ;;  %v1348_v55 = vcombine.high %v383_v51, %v386_v52  ;;  %v377_v56 = vld [vmem:[%s2040_s24 + $0x88] sm:$0xff]  ;;  %v832_v32 = vld [vmem:[%s2040_s24 + $0x78] sm:$0xf] }
  0x9b   : > { %v379_v23 = vld [vmem:[%s2040_s24 + $0xa0] sm:$0xff]  ;;  %v380_v57 = vld [vmem:[%s2040_s24 + $0xa8] sm:$0xff]  ;;  %v1347_v58 = vcombine.low %v383_v51, %v386_v52  ;;  %v829_v34 = vld [vmem:[%s2040_s24 + $0x18] sm:$0xf]  ;;  %v2132_v49 = vshrl.u32 %v414_v45, 7 }
  0x9c   : > { %v1340_v25 = vcombine.high %v376_v22, %v379_v23  ;;  %v370_v26 = vld [vmem:[%s2040_s24 + $0x40] sm:$0xff]  ;;  %v1339_v31 = vcombine.low %v376_v22, %v379_v23  ;;  %v1342_v59 = vcombine.high %v377_v56, %v380_v57  ;;  %v371_v60 = vld [vmem:[%s2040_s24 + $0x48] sm:$0xff]  ;;  %v1341_v62 = vcombine.low %v377_v56, %v380_v57  ;;  %v837_v22 = vld [vmem:[%s2040_s24 + $0x118] sm:$0xf] }
  0x9d   : > { %689 = vmatpush1.bf16.msra.mxu0 %v1357_v16  ;;  %v373_v27 = vld [vmem:[%s2040_s24 + $0x60] sm:$0xff]  ;;  %730 = vmatpush1.bf16.msra.mxu1 %v1359_v47  ;;  %v374_v61 = vld [vmem:[%s2040_s24 + $0x68] sm:$0xff]  ;;  %v838_v23 = vld [vmem:[%s2040_s24 + $0x138] sm:$0xf] }
  0x9e   : > { %690 = vmatprep.subr.bf16.mxu0 %v1352_v19  ;;  %v1334_v35 = vcombine.high %v370_v26, %v373_v27  ;;  %v364_v39 = vld [vmem:[%s2040_s24] sm:$0xff]  ;;  %v1333_v42 = vcombine.low %v370_v26, %v373_v27  ;;  %731 = vmatprep.subr.bf16.mxu1 %v1354_v50  ;;  %v1336_v63 = vcombine.high %v371_v60, %v374_v61  ;;  %v365_v0 = vld [vmem:[%s2040_s24 + $0x8] sm:$0xff]  ;;  %v839_v19 = vld [vmem:[%s2040_s24 + $0x158] sm:$0xf]  ;;  %v420_v50 = vsub.s32 1, %v2132_v49 }
  0x9f   : > { %v367_v40 = vld [vmem:[%s2040_s24 + $0x20] sm:$0xff]  ;;  %v368_v2 = vld [vmem:[%s2040_s24 + $0x28] sm:$0xff]  ;;  %v1335_v3 = vcombine.low %v371_v60, %v374_v61  ;;  %v836_v26 = vld [vmem:[%s2040_s24 + $0xf8] sm:$0xf] }
  0xa0   : > { %v1328_v44 = vcombine.high %v364_v39, %v367_v40  ;;  %v1327_v48 = vcombine.low %v364_v39, %v367_v40  ;;  %v1330_v4 = vcombine.high %v365_v0, %v368_v2  ;;  %v1329_v5 = vcombine.low %v365_v0, %v368_v2  ;;  %v2136_v51 = vld [vmem:[%s2048_s28] sm:$0x3f]  ;;  %v408_v0 = vld [vmem:[%s2040_s24 + $0x1d0] sm:$0xff] }
  0xa1   : > { %691 = vmatpush1.bf16.msra.mxu0 %v1351_v20  ;;  %732 = vmatpush1.bf16.msra.mxu1 %v1353_v54  ;;  %v840_v20 = vld [vmem:[%s2040_s24 + $0x178] sm:$0xf]  ;;  %v421_v52 = vrot.slane %v2136_v51, %v420_v50  ;;  %v416_v54 = vsub.s32 0, %v2132_v49  ;;  %v411_v2 = vld [vmem:[%s2040_s24 + $0x1f0] sm:$0xff]  ;;  %v970_v50 = vld [vmem:[%s2040_s24 + $0x19c] sm:$0xf] }
  0xa2   : > { %692 = vmatprep.subr.bf16.mxu0 %v1346_v21  ;;  %733 = vmatprep.subr.bf16.mxu1 %v1348_v55  ;;  %v1382_v21 = vcombine.low %v839_v19, %v840_v20  ;;  %v399_v10 = vld [vmem:[%s2040_s24 + $0x170] sm:$0xff] }
  0xa3   : > { %v417_v56 = vrot.slane %v2136_v51, %v416_v54  ;;  %v387_v19 = vld [vmem:[%s2040_s24 + $0xf0] sm:$0xff]  ;;  %v971_v54 = vld [vmem:[%s2040_s24 + $0x1bc] sm:$0xf] }
  0xa5   : > { %693 = vmatpush1.bf16.msra.mxu0 %v1345_v24  ;;  %734 = vmatpush1.bf16.msra.mxu1 %v1347_v58  ;;  %v1381_v24 = vcombine.low %v837_v22, %v838_v23  ;;  %v378_v22 = vld [vmem:[%s2040_s24 + $0x90] sm:$0xff] }
  0xa6   : > { %694 = vmatprep.subr.bf16.mxu0 %v1340_v25  ;;  %735 = vmatprep.subr.bf16.mxu1 %v1342_v59  ;;  %v835_v25 = vld [vmem:[%s2040_s24 + $0xd8] sm:$0xf]  ;;  %v381_v23 = vld [vmem:[%s2040_s24 + $0xb0] sm:$0xff] }
  0xa7   : > { %v1380_v27 = vcombine.low %v835_v25, %v836_v26  ;;  %v1344_v25 = vcombine.high %v378_v22, %v381_v23  ;;  %v372_v26 = vld [vmem:[%s2040_s24 + $0x50] sm:$0xff]  ;;  %v1343_v28 = vcombine.low %v378_v22, %v381_v23  ;;  %v432_v22 = vsub.s32 4, %v2132_v49 }
  0xa9   : > { %695 = vmatpush1.bf16.msra.mxu0 %v1339_v31  ;;  %736 = vmatpush1.bf16.msra.mxu1 %v1341_v62  ;;  %v831_v31 = vld [vmem:[%s2040_s24 + $0x58] sm:$0xf]  ;;  %v433_v23 = vrot.slane %v2136_v51, %v432_v22 }
  0xaa   : > { %696 = vmatprep.subr.bf16.mxu0 %v1334_v35  ;;  %737 = vmatprep.subr.bf16.mxu1 %v1336_v63  ;;  %v1378_v33 = vcombine.low %v831_v31, %v832_v32  ;;  %v830_v35 = vld [vmem:[%s2040_s24 + $0x38] sm:$0xf]  ;;  %v369_v31 = vld [vmem:[%s2040_s24 + $0x30] sm:$0xff] }
  0xab   : > { %v1377_v36 = vcombine.low %v829_v34, %v830_v35  ;;  %v424_v35 = vsub.s32 2, %v2132_v49 }
  0xad   : > { %697 = vmatpush1.bf16.msra.mxu0 %v1333_v42  ;;  %738 = vmatpush1.bf16.msra.mxu1 %v1335_v3  ;;  %v402_v3 = vld [vmem:[%s2040_s24 + $0x190] sm:$0xff] }
  0xae   : > { %698 = vmatprep.subr.bf16.mxu0 %v1328_v44  ;;  %739 = vmatprep.subr.bf16.mxu1 %v1330_v4  ;;  %v1373_v4 = vcombine.low %v408_v0, %v411_v2 }
  0xb1   : > { %699 = vmatpush1.bf16.msra.mxu0 %v1327_v48  ;;  %740 = vmatpush1.bf16.msra.mxu1 %v1329_v5  ;;  %v1374_v5 = vcombine.high %v408_v0, %v411_v2 }
  0xb2   : > { %1436 = vmatprep.subr.bf16.mxu1 %v1815_v9 }
  0xb3   : > { %766 = vmatprep.subr.bf16.mxu0 %v1374_v5 }
  0xb4   : > { %717 = vmatmul.mubr.bf16.vlgmr.msra.gmra.mxu0 %v2083_v53  ;;  %758 = vmatmul.mubr.bf16.vlgmr.msra.gmra.mxu1 %v2083_v53 }
  0xb5   : > { %798 = vmatprep.mubr.bf16.mxu0 %v1814_v8  ;;  %v1384_v8 = vcombine.low %v843_v6, %v844_v7  ;;  %1452 = vmatprep.mubr.msk.bf16.mxu1 %vm1816_vm0, %v1815_v9  ;;  %v405_v6 = vld [vmem:[%s2040_s24 + $0x1b0] sm:$0xff] }
  0xb6   : > { %v1368_v7 = vcombine.high %v402_v3, %v405_v6  ;;  %767 = vmatpush1.bf16.msra.mxu0 %v1373_v4  ;;  %v1367_v11 = vcombine.low %v402_v3, %v405_v6  ;;  %v965_v3 = vld [vmem:[%s2040_s24 + $0xfc] sm:$0xf] }
  0xb7   : > { %1437 = vmatpush3.bf16.msra.mxu1 %v1384_v8  ;;  %v396_v8 = vld [vmem:[%s2040_s24 + $0x150] sm:$0xff]  ;;  %v962_v6 = vld [vmem:[%s2040_s24 + $0x9c] sm:$0xf] }
  0xb8   : > { %1438 = vmatprep.subr.bf16.mxu1 %v1815_v9  ;;  %768 = vmatprep.subr.bf16.mxu0 %v1368_v7  ;;  %v963_v7 = vld [vmem:[%s2040_s24 + $0xbc] sm:$0xf] }
  0xba   : > { %769 = vmatpush1.bf16.msra.mxu0 %v1367_v11 }
  0xbb   : > { %1439 = vmatpush3.bf16.msra.mxu1 %v1383_v12  ;;  %v1362_v12 = vcombine.high %v396_v8, %v399_v10 }
  0xbc   : > { %1440 = vmatprep.subr.bf16.mxu1 %v1815_v9 }
  0xbd   : > { %770 = vmatprep.subr.bf16.mxu0 %v1362_v12  ;;  %v960_v12 = vld [vmem:[%s2040_s24 + $0x5c] sm:$0xf] }
  0xbf   : > { %1441 = vmatpush3.bf16.msra.mxu1 %v1382_v21 }
  0xc0   : > { %1442 = vmatprep.subr.bf16.mxu1 %v1815_v9 }
  0xc3   : > { %1443 = vmatpush3.bf16.msra.mxu1 %v1381_v24 }
  0xc4   : > { %1444 = vmatprep.subr.bf16.mxu1 %v1815_v9 }
  0xc7   : > { %1445 = vmatpush3.bf16.msra.mxu1 %v1380_v27  ;;  %v375_v27 = vld [vmem:[%s2040_s24 + $0x70] sm:$0xff] }
  0xc8   : > { %1446 = vmatprep.subr.bf16.mxu1 %v1815_v9  ;;  %v1338_v29 = vcombine.high %v372_v26, %v375_v27  ;;  %v1337_v32 = vcombine.low %v372_v26, %v375_v27 }
  0xcb   : > { %1447 = vmatpush3.bf16.msra.mxu1 %v1379_v30  ;;  %v366_v30 = vld [vmem:[%s2040_s24 + $0x10] sm:$0xff] }
  0xcc   : > { %1448 = vmatprep.subr.bf16.mxu1 %v1815_v9  ;;  %v1331_v34 = vcombine.low %v366_v30, %v369_v31 }
  0xcf   : > { %1449 = vmatpush3.bf16.msra.mxu1 %v1378_v33  ;;  %v1332_v33 = vcombine.high %v366_v30, %v369_v31 }
  0xd0   : > { %1450 = vmatprep.subr.bf16.mxu1 %v1815_v9 }
  0xd3   : > { %1451 = vmatpush3.bf16.msra.mxu1 %v1377_v36  ;;  %v425_v36 = vrot.slane %v2136_v51, %v424_v35  ;;  %v1584_v35 = vld [vmem:[%s2046_s27 + $0x30] sm:$0xff]  }
  0xd4   : > { %1476 = vmatprep.subr.bf16.mxu1 %v1815_v9 }
 0x120   : > { %v808_v13 = vpop.xlane.xlu0 %807 }
 0x121   : > { %v809_v14 = vmul.f32 0.03125, %v808_v13  ;;  %v390_v13 = vld [vmem:[%s2040_s24 + $0x110] sm:$0xff] }
 0x123   : > { %v810_v16 = vsub.f32 %v2052_v1, %v809_v14  ;;  %v393_v14 = vld [vmem:[%s2040_s24 + $0x130] sm:$0xff] }
 0x124   : > { %v1355_v20 = vcombine.low %v390_v13, %v393_v14 }
 0x125   : > { %v817_v17 = vmul.f32 %v2104_v15, %v810_v16  ;;  %v1361_v16 = vcombine.low %v396_v8, %v399_v10  ;;  %v1388_v10 = vcombine.low %v962_v6, %v963_v7 }
 0x127   : > { %v818_v18 = vmul.f32 %v817_v17, %v817_v17  ;;  %771 = vmatpush1.bf16.msra.mxu0 %v1361_v16  ;;  %v958_v16 = vld [vmem:[%s2040_s24 + $0x1c] sm:$0xf] }
 0x129   : > { %819 = vadd.xlane.f32.xlu0 %v818_v18  ;;  %v384_v18 = vld [vmem:[%s2040_s24 + $0xd0] sm:$0xff] }
 0x12a   : > { %v1350_v21 = vcombine.high %v384_v18, %v387_v19  ;;  %v1349_v24 = vcombine.low %v384_v18, %v387_v19 }
 0x174   : > { %v718_v37 = vpop.f32.mrf.mxu0  ;;  %v2128_v41 = vpop.f32.mrf.mxu1 }
 0x175   : > { %v719_v60 = vadd.f32 %v718_v37, %v417_v56  ;;  %v1376_v37 = vld [vmem:[%s2048_s28 + $0x6] ss:$0 sm:$0xff] }
 0x176   : > { %v720_v38 = vpop.f32.mrf.mxu0  ;;  %v2130_v42 = vpop.f32.mrf.mxu1 }
 0x177   : > { %v721_v55 = vadd.f32 %v720_v38, %v421_v52 }
 0x178   : > { %v722_v39 = vpop.f32.mrf.mxu0  ;;  %v763_v43 = vpop.f32.mrf.mxu1 }
 0x179   : > { %v825_v59 = vadd.f32 1.0, %v721_v55  ;;  %v760_v39 = vadd.f32 %v2128_v41, %v425_v36  ;;  %v1392_v41 = vcombine.low %v970_v50, %v971_v54  ;;  %v1585_v36 = vld [vmem:[%s2046_s27 + $0x28] sm:$0xff]  }
 0x17a   : > { %v723_v40 = vpop.f32.mrf.mxu0  ;;  %v764_v44 = vpop.f32.mrf.mxu1 }
 0x1b2   : > { %v820_v46 = vpop.xlane.xlu0 %819 }
 0x1b3   : > { %v821_v47 = vmul.f32 0.03125, %v820_v46 }
 0x1b5   : > { %v822_v48 = vadd.f32 1e-06, %v821_v47  ;;  %v972_v47 = vld [vmem:[%s2040_s24 + $0x1dc] sm:$0xf] }
 0x1b7   : > { %1591 = vrsqrt.f32 %v822_v48  ;;  %v973_v48 = vld [vmem:[%s2040_s24 + $0x1fc] sm:$0xf] }
 0x1b8   : > { %v1393_v52 = vcombine.low %v972_v47, %v973_v48 }
 0x1c4   : > { %v1592_v57 = vpop.eup %1591 }
 0x1c5   : > { %v824_v58 = vmul.f32 %v1592_v57, %v817_v17  ;;  %v1356_v17 = vcombine.high %v390_v13, %v393_v14  ;;  %v961_v13 = vld [vmem:[%s2040_s24 + $0x7c] sm:$0xf] }
 0x1c6   : > { %v1387_v14 = vcombine.low %v960_v12, %v961_v13 }
 0x1c7   : > { %v826_v61 = vmul.f32 %v825_v59, %v824_v58  ;;  %772 = vmatprep.subr.bf16.mxu0 %v1356_v17  ;;  %v968_v59 = vld [vmem:[%s2040_s24 + $0x15c] sm:$0xf] }
 0x1c8   : > { %773 = vmatpush1.bf16.msra.mxu0 %v1355_v20  ;;  %v959_v17 = vld [vmem:[%s2040_s24 + $0x3c] sm:$0xf] }
 0x1c9   : > { %v827_v62 = vadd.f32 %v826_v61, %v719_v60  ;;  %774 = vmatprep.subr.bf16.mxu0 %v1350_v21  ;;  %v969_v60 = vld [vmem:[%s2040_s24 + $0x17c] sm:$0xf]  ;;  %v1386_v18 = vcombine.low %v958_v16, %v959_v17 }
 0x1ca   : > { %v1391_v61 = vcombine.low %v968_v59, %v969_v60  ;;  %v436_v59 = vsub.s32 5, %v2132_v49 }
 0x1cb   : > { %v828_v63 = vpack.c.bf16 %v827_v62, %v827_v62  ;;  %v966_v62 = vld [vmem:[%s2040_s24 + $0x11c] sm:$0xf] }
 0x1cc   : > { %775 = vmatpush1.bf16.msra.mxu0 %v1349_v24  ;;  %v428_v24 = vsub.s32 3, %v2132_v49  ;;  %v437_v60 = vrot.slane %v2136_v51, %v436_v59 }
 0x1cd   : > { %1453 = vmatmul.mubr.bf16.vlgmr.msra.gmra.mxu1 %v828_v63  ;;  %776 = vmatprep.subr.bf16.mxu0 %v1344_v25  ;;  %v967_v63 = vld [vmem:[%s2040_s24 + $0x13c] sm:$0xf] }
 0x1ce   : > { %1492 = vmatprep.mubr.msk.bf16.mxu1 %vm1816_vm0, %v1815_v9  ;;  %v1390_v0 = vcombine.low %v966_v62, %v967_v63  ;;  %v429_v26 = vrot.slane %v2136_v51, %v428_v24 }
 0x1d0   : > { %777 = vmatpush1.bf16.msra.mxu0 %v1343_v28  ;;  %v762_v30 = vadd.f32 %v2130_v42, %v429_v26  ;;  %v1586_v42 = vld [vmem:[%s2046_s27 + $0x20] sm:$0xff]  }
 0x1d1   : > { %778 = vmatprep.subr.bf16.mxu0 %v1338_v29 }
 0x1d4   : > { %779 = vmatpush1.bf16.msra.mxu0 %v1337_v32 }
 0x1d5   : > { %780 = vmatprep.subr.bf16.mxu0 %v1332_v33 }
 0x1d8   : > { %781 = vmatpush1.bf16.msra.mxu0 %v1331_v34  ;;  %v1583_v34 = vld [vmem:[%s2046_s27 + $0x38] sm:$0xff]  }
 0x1d9   : > { %1456 = vmatprep.subr.bf16.mxu0 %v1815_v9  ;;  %1477 = vmatpush3.bf16.msra.mxu1 %v1583_v34 }
 0x1da   : > { %1478 = vmatprep.subr.bf16.mxu1 %v1815_v9 }
 0x1db   : > { %799 = vmatmul.mubr.bf16.vlgmr.msra.gmra.mxu0 %v2083_v53 }
 0x1dc   : > { %1472 = vmatprep.mubr.msk.bf16.mxu0 %vm1816_vm0, %v1815_v9  ;;  %1457 = vmatpush3.bf16.msra.mxu0 %v1393_v52 }
 0x1dd   : > { %1458 = vmatprep.subr.bf16.mxu0 %v1815_v9  ;;  %1479 = vmatpush3.bf16.msra.mxu1 %v1584_v35 }
 0x1de   : > { %1480 = vmatprep.subr.bf16.mxu1 %v1815_v9 }
 0x1e0   : > { %1459 = vmatpush3.bf16.msra.mxu0 %v1392_v41 }
 0x1e1   : > { %1460 = vmatprep.subr.bf16.mxu0 %v1815_v9  ;;  %1481 = vmatpush3.bf16.msra.mxu1 %v1585_v36 }
 0x1e2   : > { %1482 = vmatprep.subr.bf16.mxu1 %v1815_v9 }
 0x1e4   : > { %1461 = vmatpush3.bf16.msra.mxu0 %v1391_v61  ;;  %v1394_v61 = vld [vmem:[%s2048_s28 + $0x8] ss:$0 sm:$0xff] }
 0x1e5   : > { %1462 = vmatprep.subr.bf16.mxu0 %v1815_v9  ;;  %1483 = vmatpush3.bf16.msra.mxu1 %v1586_v42 }
 0x1e6   : > { %1484 = vmatprep.subr.bf16.mxu1 %v1815_v9 }
 0x1e8   : > { %1463 = vmatpush3.bf16.msra.mxu0 %v1390_v0 }
 0x1e9   : > { %1464 = vmatprep.subr.bf16.mxu0 %v1815_v9 }
 0x28d   : > { %v934_v38 = vpop.f32.mrf.mxu1 }
 0x28e   : > { %v935_v40 = vadd.f32 %v1376_v37, %v934_v38  ;;  %v1587_v37 = vld [vmem:[%s2046_s27 + $0x18] sm:$0xff]   ;;  %v1588_v38 = vld [vmem:[%s2046_s27 + $0x10] sm:$0xff]  }
 0x28f   : > { %v1454_v43 = vpop.f32.mrf.mxu1  ;;  %1485 = vmatpush3.bf16.msra.mxu1 %v1587_v37 }
 0x290   : > { %v940_v44 = vmul.f32 %v935_v40, %v760_v39  ;;  %1486 = vmatprep.subr.bf16.mxu1 %v1815_v9  ;;  %v1589_v39 = vld [vmem:[%s2046_s27 + $0x8] sm:$0xff]   ;;  %v1590_v40 = vld [vmem:[%s2046_s27] sm:$0xff]  }
 0x291   : > { %v937_v45 = vpop.f32.mrf.mxu1  ;;  %v1385_v43 = vld [vmem:[%s2048_s28 + $0x7] ss:$0 sm:$0xff] }
 0x292   : > { %v2168_v46 = vadd.f32 %v940_v44, %v2052_v1 }
 0x293   : > { %v1455_v53 = vpop.f32.mrf.mxu1  ;;  %1487 = vmatpush3.bf16.msra.mxu1 %v1588_v38 }
 0x294   : > { %942 = vadd.xlane.f32.xlu1 %v2168_v46  ;;  %1488 = vmatprep.subr.bf16.mxu1 %v1815_v9 }
 0x297   : > { %1489 = vmatpush3.bf16.msra.mxu1 %v1589_v39 }
 0x298   : > { %1490 = vmatprep.subr.bf16.mxu1 %v1815_v9 }
 0x29b   : > { %v800_v2 = vpop.f32.mrf.mxu0  ;;  %1491 = vmatpush3.bf16.msra.mxu1 %v1590_v40 }
 0x29c   : > { %v801_v25 = vadd.f32 %v800_v2, %v433_v23 }
 0x29d   : > { %v2187_v5 = vpop.f32.mrf.mxu0 }
 0x29e   : > { %v954_v27 = vadd.f32 1.0, %v801_v25  ;;  %v803_v63 = vadd.f32 %v2187_v5, %v437_v60 }
 0x29f   : > { %v804_v8 = vpop.f32.mrf.mxu0 }
 0x2a1   : > { %v805_v11 = vpop.f32.mrf.mxu0 }
 0x31d   : > { %v943_v1 = vpop.xlane.xlu1 %942 }
 0x31e   : > { %v944_v55 = vmul.f32 0.03125, %v943_v1 }
 0x320   : > { %v945_v56 = vsub.f32 %v2168_v46, %v944_v55 }
 0x322   : > { %v946_v57 = vmul.f32 %v2104_v15, %v945_v56  ;;  %v964_v15 = vld [vmem:[%s2040_s24 + $0xdc] sm:$0xf] }
 0x323   : > { %v1389_v4 = vcombine.low %v964_v15, %v965_v3 }
 0x324   : > { %v947_v58 = vmul.f32 %v946_v57, %v946_v57 }
 0x325   : > { %1465 = vmatpush3.bf16.msra.mxu0 %v1389_v4 }
 0x326   : > { %948 = vadd.xlane.f32.xlu1 %v947_v58  ;;  %1466 = vmatprep.subr.bf16.mxu0 %v1815_v9 }
 0x329   : > { %1467 = vmatpush3.bf16.msra.mxu0 %v1388_v10 }
 0x32a   : > { %1468 = vmatprep.subr.bf16.mxu0 %v1815_v9 }
 0x32d   : > { %1469 = vmatpush3.bf16.msra.mxu0 %v1387_v14 }
 0x32e   : > { %1470 = vmatprep.subr.bf16.mxu0 %v1815_v9 }
 0x331   : > { %1471 = vmatpush3.bf16.msra.mxu0 %v1386_v18 }
 0x3af   : > { %v949_v19 = vpop.xlane.xlu1 %948 }
 0x3b0   : > { %v950_v20 = vmul.f32 0.03125, %v949_v19 }
 0x3b2   : > { %v951_v21 = vadd.f32 1e-06, %v950_v20 }
 0x3b4   : > { %1593 = vrsqrt.f32 %v951_v21 }
 0x3c1   : > { %v1594_v28 = vpop.eup %1593 }
 0x3c2   : > { %v953_v29 = vmul.f32 %v1594_v28, %v946_v57 }
 0x3c4   : > { %v955_v31 = vmul.f32 %v954_v27, %v953_v29 }
 0x3c6   : > { %v956_v32 = vadd.f32 %v955_v31, %v762_v30 }
 0x3c8   : > { %v957_v33 = vpack.c.bf16 %v956_v32, %v956_v32 }
 0x3ca   : > { %1473 = vmatmul.mubr.bf16.vlgmr.msra.gmra.mxu0 %v957_v33 }
 0x48a   : > { %v1063_v44 = vpop.f32.mrf.mxu0 }
 0x48b   : > { %v1064_v45 = vadd.f32 %v1385_v43, %v1063_v44 }
 0x48c   : > { %v1474_v53 = vpop.f32.mrf.mxu0 }
 0x48d   : > { %v1070_v47 = vmul.f32 0.044715, %v1064_v45  ;;  %v1069_v56 = vmul.f32 0.5, %v1064_v45 }
 0x48e   : > { %v1066_v48 = vpop.f32.mrf.mxu0 }
 0x48f   : > { %v1071_v50 = vmul.f32 %v1070_v47, %v1064_v45 }
 0x490   : > { %v1475_v52 = vpop.f32.mrf.mxu0 }
 0x491   : > { %v1072_v54 = vmul.f32 %v1071_v50, %v1064_v45 }
 0x493   : > { %v1073_v41 = vadd.f32 %v1072_v54, %v1064_v45 }
 0x495   : > { %v1074_v1 = vmul.f32 0.7978846, %v1073_v41 }
 0x497   : > { %1595 = vtanh.f32 %v1074_v1 }
 0x4a4   : > { %v1596_v55 = vpop.eup %1595 }
 0x4a5   : > { %v1076_v57 = vadd.f32 1.0, %v1596_v55 }
 0x4a7   : > { %v1077_v58 = vmul.f32 %v1076_v57, %v1069_v56 }
 0x4a9   : > { %v1078_v9 = vpack.c.bf16 %v1077_v58, %v1077_v58 }
 0x4ab   : > { %1493 = vmatmul.mubr.bf16.vlgmr.msra.gmra.mxu1 %v1078_v9 }
 0x56b   : > { %v1184_v62 = vpop.f32.mrf.mxu1 }
 0x56c   : > { %v1185_v0 = vadd.f32 %v1394_v61, %v1184_v62 }
 0x56d   : > { %v1494_v2 = vpop.f32.mrf.mxu1 }
 0x56e   : > { %v1190_v15 = vmul.f32 %v1185_v0, %v803_v63 }
 0x56f   : > { %v1187_v3 = vpop.f32.mrf.mxu1 }
 0x570   : > { %v1191_v4 = vadd.f32 %v1190_v15, %v2168_v46 }
 0x571   : > { %v1495_v6 = vpop.f32.mrf.mxu1 }
 0x572   : > { %1192 = vst [vmem:[#allocation10] sm:$0xff] %v1191_v4 }
 0x573   : > { %1746 = shalt.err (!%p1743_p10)
}
 0x574   : > { %1514 = dma.vmem_to_hbm [thread:$0]  (%p1539_p3), %s1201_s16, 128, %s2255_s6, [#allocation4]  }
 0x575   : > { %1786 = dma.done.wait (%p1539_p3), [#allocation4], 128  }
 0x576   : > { %1788 = vsyncadd (%p1539_p3), [#allocation4], 4294967168 }
 0x577 PF: > { %p16_p13 = scmp.ge.s32.totalorder %s1875_s26, 4   ;;  %s2279_s21 = smov %s1795_s22 }
 0x578   : > { %s2280_s22 = smov %s1799_s23  ;;  %s2281_s23 = smov %s1885_s29 }
 0x579   : > { %s2282_s24 = smov %s1875_s26  ;;  %18 = sbr.rel (!%p16_p13) target bundleno = 6 (0x6), region = 114 }
 0x57e   :  { %1213 = vsyncpa [#allocation3], 1 }
 0x57f   :  { %1215 = vsyncpa [#allocation3 + $0x1], 1 }
 0x580   :  { %1216 = vsyncpa [#allocation6], 1 }
 0x581   :  { %1217 = vsyncpa [#allocation4], 1 }
 0x582   :  { %1219 = vsyncpa [#allocation4 + $0x1], 1 }

</bundles_post_ra>
